<compile_context>
chip_gen: v5e
topology: v5e:2x2
jax: 0.10.0
libtpu: 0.0.40
codegen_flags: <defaults>
</compile_context>

<pallas_src>
import jax
import jax.numpy as jnp
from jax.experimental import pallas as pl
from jax.experimental.pallas import tpu as pltpu


# ----------------------------- static helpers ------------------------------
def _round_up(x, m):
    return ((x + m - 1) // m) * m


def _cdiv(a, b):
    return -(-a // b)


def _pick_tile(total, cap):
    """Largest multiple-of-128 divisor of `total` (itself a multiple of 128) <= cap."""
    best = 128
    for d in range(128, min(total, cap) + 1, 128):
        if total % d == 0:
            best = d
    return best


# -------- Kernel A: ConvTranspose2d(k=2,s=2) folded through w_c[:, Cf:] -----
def deconv_kernel(x_ref, w_ref, b_ref, o_ref):
    # x_ref: [1, Cin, TA]   x1, positions on lanes
    # w_ref: [4*Cf, Cin]    rows ordered (dy, dx, o): deconv composed with w_c_up
    # b_ref: [4*Cf, 1]      folded bias w_c_up @ b_up
    # o_ref: [1, 4*Cf, TA]  lane-dense store
    o_ref[0] = (jnp.dot(w_ref[...], x_ref[0],
                        preferred_element_type=jnp.float32)
                + b_ref[...]).astype(o_ref.dtype)


# ----- Kernel B: 3x3 conv + LeakyReLU + (med half of) 1x1 conv + up add -----
def _make_fused_kernel(cf, tp, halo, wp):
    def fused_kernel(x2a_ref, x2h_ref, up_ref, wmed_ref, bmed_ref,
                     wc_ref, bc_ref, out_ref, win_ref):
        # x2a_ref : [1, Cf, TP]    current tile of padded x2 (flat positions)
        # x2h_ref : [1, Cf, HALO]  128-aligned halo (prefix of the next tile)
        # up_ref  : [1, Cf, TP]    folded deconv contribution for these positions
        # wmed_ref: [9, Cf, Cf]    3x3 conv weight, one [Cout, Cin] slab per tap
        # wc_ref  : [Cf, Cf]       1x1 conv weight, med half only
        # out_ref : [1, Cf, TP]
        # win_ref : VMEM [Cf, TP + HALO] scratch window (all-static addressing)
        win_ref[:, :tp] = x2a_ref[0]
        win_ref[:, tp:] = x2h_ref[0]

        acc = jnp.zeros((cf, tp), jnp.float32)
        for ky in range(3):
            for kx in range(3):
                s = ky * wp + kx                          # static lane offset
                acc = acc + jnp.dot(wmed_ref[ky * 3 + kx],
                                    win_ref[:, s:s + tp],
                                    preferred_element_type=jnp.float32)
        med = acc + bmed_ref[...]
        med = jnp.maximum(med, 0.2 * med)                 # exact LeakyReLU(0.2)

        res = (jnp.dot(wc_ref[...], med, preferred_element_type=jnp.float32)
               + bc_ref[...] + up_ref[0])
        out_ref[0] = res.astype(out_ref.dtype)

    return fused_kernel


# --------------------------------- wrapper ---------------------------------
def upsample_concat_squeeze(x1, x2, params):
    """x1: [B, Cin, H, W], x2: [B, Cf, H2, W2] (NCHW) -> [B, Cf, H2, W2]."""
    B, Cin, H, W = x1.shape
    _, Cf, H2, W2 = x2.shape
    HW = H * W

    # ---------------- weight folding (tiny, host side) ----------------------
    w_c2 = params["w_c"][:, :, 0, 0]                  # [Cf, Cf + Ch]
    w_c_med = w_c2[:, :Cf]                            # acts on the med branch
    w_c_up = w_c2[:, Cf:]                             # acts on the x1_up branch
    # W_fold[dy, dx, o, k] = sum_c w_c_up[o, c] * w_up[k, c, dy, dx]
    w_fold = jnp.einsum('oc,kcyx->yxok', w_c_up, params["w_up"])
    w_wide = w_fold.reshape(4 * Cf, Cin)              # rows ordered (dy, dx, o)
    b_fold = w_c_up @ params["b_up"]                  # [Cf]
    b_wide = jnp.tile(b_fold, 4).reshape(4 * Cf, 1)

    # ---------------- Kernel A: folded deconv, positions on lanes -----------
    HWp = _round_up(HW, 128)
    TA = _pick_tile(HWp, 2048)
    x1f = jnp.pad(x1.reshape(B, Cin, HW), ((0, 0), (0, 0), (0, HWp - HW)))

    up_sub = pl.pallas_call(
        deconv_kernel,
        out_shape=jax.ShapeDtypeStruct((B, 4 * Cf, HWp), jnp.float32),
        grid_spec=pltpu.PrefetchScalarGridSpec(
            num_scalar_prefetch=0,
            grid=(B, HWp // TA),
            in_specs=[
                pl.BlockSpec((1, Cin, TA), lambda b, t: (b, 0, t)),
                pl.BlockSpec((4 * Cf, Cin), lambda b, t: (0, 0)),
                pl.BlockSpec((4 * Cf, 1), lambda b, t: (0, 0)),
            ],
            out_specs=pl.BlockSpec((1, 4 * Cf, TA), lambda b, t: (b, 0, t)),
        ),
        compiler_params=pltpu.CompilerParams(
            dimension_semantics=("parallel", "parallel"),
            vmem_limit_bytes=48 * 1024 * 1024),
    )(x1f, w_wide, b_wide)

    # ---- glue (single fused pass): pixel-shuffle the 4 phases + pads --------
    Wp = W2 + 2                                       # padded row stride
    Hp = H2 + 2
    diffY, diffX = H2 - 2 * H, W2 - 2 * W
    up = up_sub[:, :, :HW].reshape(B, 2, 2, Cf, H, W)
    up = jnp.transpose(up, (0, 3, 4, 1, 5, 2)).reshape(B, Cf, 2 * H, 2 * W)
    up = jnp.pad(up, ((0, 0), (0, 0),
                      (diffY // 2, diffY - diffY // 2),
                      (diffX // 2, diffX - diffX // 2 + (Wp - W2))))
    # TODO(synk): this transpose+pad is the last piece of inter-kernel glue.

    # ---------------- Kernel B tiling over flat output positions ------------
    Ltot = H2 * Wp
    HALO = _round_up(2 * Wp + 2, 128)                 # 3x3-conv lane halo
    TP = _round_up(max(min(2048, _round_up(Ltot, 128)), HALO), HALO)
    n_t = _cdiv(Ltot, TP)
    Lpad = n_t * TP
    Lx2 = Lpad + HALO
    RATIO = TP // HALO

    up_flat = jnp.pad(up.reshape(B, Cf, Ltot),
                      ((0, 0), (0, 0), (0, Lpad - Ltot)))

    # ONE padded copy of x2 (zero border for the 3x3 conv), flat positions.
    # Seam columns (x >= W2) and the alignment tail are garbage and cropped at
    # the end; the +HALO slack keeps every tap read in-bounds.
    x2p = jnp.pad(x2, ((0, 0), (0, 0), (1, 1), (1, Wp - W2 - 1)))  # [B,Cf,Hp,Wp]
    x2p_flat = jnp.pad(x2p.reshape(B, Cf, Hp * Wp),
                       ((0, 0), (0, 0), (0, Lx2 - Hp * Wp)))

    w_med_taps = jnp.transpose(params["w_med"], (2, 3, 0, 1)).reshape(9, Cf, Cf)
    b_med_c = params["b_med"].reshape(Cf, 1)
    b_c_c = params["b_c"].reshape(Cf, 1)

    out_flat = pl.pallas_call(
        _make_fused_kernel(Cf, TP, HALO, Wp),
        out_shape=jax.ShapeDtypeStruct((B, Cf, Lpad), jnp.float32),
        grid_spec=pltpu.PrefetchScalarGridSpec(
            num_scalar_prefetch=0,
            grid=(B, n_t),
            in_specs=[
                pl.BlockSpec((1, Cf, TP), lambda b, t: (b, 0, t)),
                pl.BlockSpec((1, Cf, HALO), lambda b, t: (b, 0, (t + 1) * RATIO)),
                pl.BlockSpec((1, Cf, TP), lambda b, t: (b, 0, t)),
                pl.BlockSpec((9, Cf, Cf), lambda b, t: (0, 0, 0)),
                pl.BlockSpec((Cf, 1), lambda b, t: (0, 0)),
                pl.BlockSpec((Cf, Cf), lambda b, t: (0, 0)),
                pl.BlockSpec((Cf, 1), lambda b, t: (0, 0)),
            ],
            out_specs=pl.BlockSpec((1, Cf, TP), lambda b, t: (b, 0, t)),
            scratch_shapes=[pltpu.VMEM((Cf, TP + HALO), jnp.float32)],
        ),
        compiler_params=pltpu.CompilerParams(
            dimension_semantics=("parallel", "parallel"),
            vmem_limit_bytes=48 * 1024 * 1024),
    )(x2p_flat, x2p_flat, up_flat, w_med_taps, b_med_c, w_c_med, b_c_c)

    # crop seam columns / alignment tail; output is already NCHW-ordered
    out = out_flat[:, :, :Ltot].reshape(B, Cf, H2, Wp)[:, :, :, :W2]
    return out


# ------------------------- pure-JAX reference (NCHW) ------------------------
def ref_forward(x1, x2, params):
    dn = ("NCHW", "OIHW", "NCHW")
    # ConvTranspose2d(k=2, s=2) == dilated conv with flipped, transposed weight
    k_up = jnp.flip(jnp.transpose(params["w_up"], (1, 0, 2, 3)), axis=(2, 3))
    x1u = jax.lax.conv_general_dilated(
        x1, k_up, window_strides=(1, 1), padding=((1, 1), (1, 1)),
        lhs_dilation=(2, 2), dimension_numbers=dn)
    x1u = x1u + params["b_up"].reshape(1, -1, 1, 1)
    diffY = x2.shape[2] - x1u.shape[2]
    diffX = x2.shape[3] - x1u.shape[3]
    x1u = jnp.pad(x1u, ((0, 0), (0, 0),
                        (diffY // 2, diffY - diffY // 2),
                        (diffX // 2, diffX - diffX // 2)))
    m = jax.lax.conv_general_dilated(
        x2, params["w_med"], window_strides=(1, 1), padding=((1, 1), (1, 1)),
        dimension_numbers=dn)
    m = m + params["b_med"].reshape(1, -1, 1, 1)
    m = jnp.where(m >= 0.0, m, 0.2 * m)
    cat = jnp.concatenate([m, x1u], axis=1)
    out = jax.lax.conv_general_dilated(
        cat, params["w_c"], window_strides=(1, 1), padding=((0, 0), (0, 0)),
        dimension_numbers=dn)
    return out + params["b_c"].reshape(1, -1, 1, 1)


if __name__ == "__main__":
    # small shapes consistent with the module:
    #   filters_in = 8, filters_out = 4
    #   x1: [B, filters_in, H, W], x2: [B, filters_out, 2H, 2W]
    B, Cin, Cf, H, W = 2, 8, 4, 8, 8
    Ch = Cin // 2

    key = jax.random.PRNGKey(0)
    ks = jax.random.split(key, 8)
    x1 = jax.random.normal(ks[0], (B, Cin, H, W), jnp.float32)
    x2 = jax.random.normal(ks[1], (B, Cf, 2 * H, 2 * W), jnp.float32)

    params = {
        # ConvTranspose2d(Cin, Cin//2, k=2, s=2): weight [Cin, Cin//2, 2, 2]
        "w_up": 0.1 * jax.random.normal(ks[2], (Cin, Ch, 2, 2), jnp.float32),
        "b_up": 0.1 * jax.random.normal(ks[3], (Ch,), jnp.float32),
        # Conv2d(Cf, Cf, 3, 1, 1): weight [Cf, Cf, 3, 3]
        "w_med": 0.1 * jax.random.normal(ks[4], (Cf, Cf, 3, 3), jnp.float32),
        "b_med": 0.1 * jax.random.normal(ks[5], (Cf,), jnp.float32),
        # Conv2d(Ch + Cf, Cf, 1): weight [Cf, Ch + Cf, 1, 1]
        "w_c": 0.1 * jax.random.normal(ks[6], (Cf, Ch + Cf, 1, 1), jnp.float32),
        "b_c": 0.1 * jax.random.normal(ks[7], (Cf,), jnp.float32),
    }

    fwd = jax.jit(upsample_concat_squeeze)
    out = jax.block_until_ready(fwd(x1, x2, params))
    ref = jax.block_until_ready(ref_forward(x1, x2, params))

    assert out.shape == (B, Cf, 2 * H, 2 * W), out.shape
    err = float(jnp.max(jnp.abs(out - ref)))
    assert err < 2e-4, err
    print("KERNEL_OK")
</pallas_src>

<mosaic_0001>
module attributes {stable_mosaic.version = 11 : i64} {
  func.func @deconv_kernel(%arg0: i32, %arg1: i32, %arg2: memref<1x8x128xf32, #tpu.memory_space<vmem>>, %arg3: memref<16x8xf32, #tpu.memory_space<vmem>>, %arg4: memref<16x1xf32, #tpu.memory_space<vmem>>, %arg5: memref<1x16x128xf32, #tpu.memory_space<vmem>>) attributes {dimension_semantics = [#tpu.dimension_semantics<parallel>, #tpu.dimension_semantics<parallel>], iteration_bounds = array<i64: 2, 1>, scalar_prefetch = 0 : i64, scratch_operands = 0 : i64, tpu.core_type = #tpu.core_type<tc>, window_params = [{transform_indices = @transform_0, window_bounds = array<i64: 1, 8, 128>}, {pipeline_mode = #tpu.pipeline_mode<synchronous>, transform_indices = @transform_1, window_bounds = array<i64: 16, 8>}, {pipeline_mode = #tpu.pipeline_mode<synchronous>, transform_indices = @transform_2, window_bounds = array<i64: 16, 1>}, {transform_indices = @transform_3, window_bounds = array<i64: 1, 16, 128>}]} {
    %c0 = arith.constant 0 : index
    %c0_0 = arith.constant 0 : index
    %0 = vector.load %arg3[%c0, %c0_0] : memref<16x8xf32, #tpu.memory_space<vmem>>, vector<16x8xf32>
    %c0_1 = arith.constant 0 : index
    %c0_2 = arith.constant 0 : index
    %c0_3 = arith.constant 0 : index
    %1 = vector.load %arg2[%c0_1, %c0_2, %c0_3] : memref<1x8x128xf32, #tpu.memory_space<vmem>>, vector<1x8x128xf32>
    %2 = vector.shape_cast %1 : vector<1x8x128xf32> to vector<8x128xf32>
    %cst = arith.constant dense<0.000000e+00> : vector<16x128xf32>
    %3 = tpu.matmul %0, %2, %cst {dimension_numbers = #tpu.dot_dimension_numbers<[1], [0], [0], [1], [0, 0, 1, 1], [], []>} : vector<16x8xf32>, vector<8x128xf32>, vector<16x128xf32> -> vector<16x128xf32>
    %c0_4 = arith.constant 0 : index
    %c0_5 = arith.constant 0 : index
    %4 = vector.load %arg4[%c0_4, %c0_5] : memref<16x1xf32, #tpu.memory_space<vmem>>, vector<16x1xf32>
    %5 = vector.broadcast %4 : vector<16x1xf32> to vector<16x128xf32>
    %6 = arith.addf %3, %5 : vector<16x128xf32>
    %c0_6 = arith.constant 0 : index
    %c0_7 = arith.constant 0 : index
    %c0_8 = arith.constant 0 : index
    %7 = vector.load %arg5[%c0_6, %c0_7, %c0_8] : memref<1x16x128xf32, #tpu.memory_space<vmem>>, vector<1x16x128xf32>
    %8 = vector.shape_cast %7 : vector<1x16x128xf32> to vector<16x128xf32>
    %9 = vector.shape_cast %6 : vector<16x128xf32> to vector<1x16x128xf32>
    tpu.vector_store %arg5[%c0_6, %c0_7, %c0_8], %9 {strides = array<i32>} : memref<1x16x128xf32, #tpu.memory_space<vmem>>, vector<1x16x128xf32>,
    return
  }
  func.func @transform_0(%arg0: i32, %arg1: i32) -> (i32, i32, i32) {
    %c0_i32 = arith.constant 0 : i32
    %c0_i32_0 = arith.constant 0 : i32
    return %arg0, %c0_i32, %arg1 : i32, i32, i32
  }
  func.func @transform_1(%arg0: i32, %arg1: i32) -> (i32, i32) {
    %c0_i32 = arith.constant 0 : i32
    %c0_i32_0 = arith.constant 0 : i32
    %c0_i32_1 = arith.constant 0 : i32
    return %c0_i32, %c0_i32_0 : i32, i32
  }
  func.func @transform_2(%arg0: i32, %arg1: i32) -> (i32, i32) {
    %c0_i32 = arith.constant 0 : i32
    %c0_i32_0 = arith.constant 0 : i32
    %c0_i32_1 = arith.constant 0 : i32
    return %c0_i32, %c0_i32_0 : i32, i32
  }
  func.func @transform_3(%arg0: i32, %arg1: i32) -> (i32, i32, i32) {
    %c0_i32 = arith.constant 0 : i32
    %c0_i32_0 = arith.constant 0 : i32
    return %arg0, %c0_i32, %arg1 : i32, i32, i32
  }
}

module attributes {stable_mosaic.version = 11 : i64} {
  func.func @fused_kernel(%arg0: i32, %arg1: i32, %arg2: memref<1x4x384xf32, #tpu.memory_space<vmem>>, %arg3: memref<1x4x128xf32, #tpu.memory_space<vmem>>, %arg4: memref<1x4x384xf32, #tpu.memory_space<vmem>>, %arg5: memref<9x4x4xf32, #tpu.memory_space<vmem>>, %arg6: memref<4x1xf32, #tpu.memory_space<vmem>>, %arg7: memref<4x4xf32, #tpu.memory_space<vmem>>, %arg8: memref<4x1xf32, #tpu.memory_space<vmem>>, %arg9: memref<1x4x384xf32, #tpu.memory_space<vmem>>, %arg10: memref<4x512xf32, #tpu.memory_space<vmem>>) attributes {dimension_semantics = [#tpu.dimension_semantics<parallel>, #tpu.dimension_semantics<parallel>], iteration_bounds = array<i64: 2, 1>, scalar_prefetch = 0 : i64, scratch_operands = 1 : i64, tpu.core_type = #tpu.core_type<tc>, window_params = [{transform_indices = @transform_0, window_bounds = array<i64: 1, 4, 384>}, {transform_indices = @transform_1, window_bounds = array<i64: 1, 4, 128>}, {transform_indices = @transform_2, window_bounds = array<i64: 1, 4, 384>}, {pipeline_mode = #tpu.pipeline_mode<synchronous>, transform_indices = @transform_3, window_bounds = array<i64: 9, 4, 4>}, {pipeline_mode = #tpu.pipeline_mode<synchronous>, transform_indices = @transform_4, window_bounds = array<i64: 4, 1>}, {pipeline_mode = #tpu.pipeline_mode<synchronous>, transform_indices = @transform_5, window_bounds = array<i64: 4, 4>}, {pipeline_mode = #tpu.pipeline_mode<synchronous>, transform_indices = @transform_6, window_bounds = array<i64: 4, 1>}, {transform_indices = @transform_7, window_bounds = array<i64: 1, 4, 384>}]} {
    %c0 = arith.constant 0 : index
    %c0_0 = arith.constant 0 : index
    %c0_1 = arith.constant 0 : index
    %0 = vector.load %arg2[%c0, %c0_0, %c0_1] : memref<1x4x384xf32, #tpu.memory_space<vmem>>, vector<1x4x384xf32>
    %1 = vector.shape_cast %0 : vector<1x4x384xf32> to vector<4x384xf32>
    %c0_2 = arith.constant 0 : index
    %c0_3 = arith.constant 0 : index
    %2 = vector.load %arg10[%c0_2, %c0_3] : memref<4x512xf32, #tpu.memory_space<vmem>>, vector<4x384xf32>
    tpu.vector_store %arg10[%c0_2, %c0_3], %1 {strides = array<i32>} : memref<4x512xf32, #tpu.memory_space<vmem>>, vector<4x384xf32>,
    %c0_4 = arith.constant 0 : index
    %c0_5 = arith.constant 0 : index
    %c0_6 = arith.constant 0 : index
    %3 = vector.load %arg3[%c0_4, %c0_5, %c0_6] : memref<1x4x128xf32, #tpu.memory_space<vmem>>, vector<1x4x128xf32>
    %4 = vector.shape_cast %3 : vector<1x4x128xf32> to vector<4x128xf32>
    %c0_7 = arith.constant 0 : index
    %c384 = arith.constant 384 : index
    %5 = vector.load %arg10[%c0_7, %c384] : memref<4x512xf32, #tpu.memory_space<vmem>>, vector<4x128xf32>
    tpu.vector_store %arg10[%c0_7, %c384], %4 {strides = array<i32>} : memref<4x512xf32, #tpu.memory_space<vmem>>, vector<4x128xf32>,
    %cst = arith.constant 0.000000e+00 : f32
    %6 = vector.broadcast %cst : f32 to vector<4x384xf32>
    %c0_8 = arith.constant 0 : index
    %c0_9 = arith.constant 0 : index
    %c0_10 = arith.constant 0 : index
    %7 = vector.load %arg5[%c0_8, %c0_9, %c0_10] : memref<9x4x4xf32, #tpu.memory_space<vmem>>, vector<1x4x4xf32>
    %8 = vector.shape_cast %7 : vector<1x4x4xf32> to vector<4x4xf32>
    %c0_11 = arith.constant 0 : index
    %c0_12 = arith.constant 0 : index
    %9 = vector.load %arg10[%c0_11, %c0_12] : memref<4x512xf32, #tpu.memory_space<vmem>>, vector<4x384xf32>
    %cst_13 = arith.constant dense<0.000000e+00> : vector<4x384xf32>
    %10 = tpu.matmul %8, %9, %cst_13 {dimension_numbers = #tpu.dot_dimension_numbers<[1], [0], [0], [1], [0, 0, 1, 1], [], []>} : vector<4x4xf32>, vector<4x384xf32>, vector<4x384xf32> -> vector<4x384xf32>
    %11 = arith.addf %6, %10 : vector<4x384xf32>
    %c1 = arith.constant 1 : index
    %c0_14 = arith.constant 0 : index
    %c0_15 = arith.constant 0 : index
    %12 = vector.load %arg5[%c1, %c0_14, %c0_15] : memref<9x4x4xf32, #tpu.memory_space<vmem>>, vector<1x4x4xf32>
    %13 = vector.shape_cast %12 : vector<1x4x4xf32> to vector<4x4xf32>
    %c0_16 = arith.constant 0 : index
    %c1_17 = arith.constant 1 : index
    %14 = vector.load %arg10[%c0_16, %c1_17] : memref<4x512xf32, #tpu.memory_space<vmem>>, vector<4x384xf32>
    %cst_18 = arith.constant dense<0.000000e+00> : vector<4x384xf32>
    %15 = tpu.matmul %13, %14, %cst_18 {dimension_numbers = #tpu.dot_dimension_numbers<[1], [0], [0], [1], [0, 0, 1, 1], [], []>} : vector<4x4xf32>, vector<4x384xf32>, vector<4x384xf32> -> vector<4x384xf32>
    %16 = arith.addf %11, %15 : vector<4x384xf32>
    %c2 = arith.constant 2 : index
    %c0_19 = arith.constant 0 : index
    %c0_20 = arith.constant 0 : index
    %17 = vector.load %arg5[%c2, %c0_19, %c0_20] : memref<9x4x4xf32, #tpu.memory_space<vmem>>, vector<1x4x4xf32>
    %18 = vector.shape_cast %17 : vector<1x4x4xf32> to vector<4x4xf32>
    %c0_21 = arith.constant 0 : index
    %c2_22 = arith.constant 2 : index
    %19 = vector.load %arg10[%c0_21, %c2_22] : memref<4x512xf32, #tpu.memory_space<vmem>>, vector<4x384xf32>
    %cst_23 = arith.constant dense<0.000000e+00> : vector<4x384xf32>
    %20 = tpu.matmul %18, %19, %cst_23 {dimension_numbers = #tpu.dot_dimension_numbers<[1], [0], [0], [1], [0, 0, 1, 1], [], []>} : vector<4x4xf32>, vector<4x384xf32>, vector<4x384xf32> -> vector<4x384xf32>
    %21 = arith.addf %16, %20 : vector<4x384xf32>
    %c3 = arith.constant 3 : index
    %c0_24 = arith.constant 0 : index
    %c0_25 = arith.constant 0 : index
    %22 = vector.load %arg5[%c3, %c0_24, %c0_25] : memref<9x4x4xf32, #tpu.memory_space<vmem>>, vector<1x4x4xf32>
    %23 = vector.shape_cast %22 : vector<1x4x4xf32> to vector<4x4xf32>
    %c0_26 = arith.constant 0 : index
    %c18 = arith.constant 18 : index
    %24 = vector.load %arg10[%c0_26, %c18] : memref<4x512xf32, #tpu.memory_space<vmem>>, vector<4x384xf32>
    %cst_27 = arith.constant dense<0.000000e+00> : vector<4x384xf32>
    %25 = tpu.matmul %23, %24, %cst_27 {dimension_numbers = #tpu.dot_dimension_numbers<[1], [0], [0], [1], [0, 0, 1, 1], [], []>} : vector<4x4xf32>, vector<4x384xf32>, vector<4x384xf32> -> vector<4x384xf32>
    %26 = arith.addf %21, %25 : vector<4x384xf32>
    %c4 = arith.constant 4 : index
    %c0_28 = arith.constant 0 : index
    %c0_29 = arith.constant 0 : index
    %27 = vector.load %arg5[%c4, %c0_28, %c0_29] : memref<9x4x4xf32, #tpu.memory_space<vmem>>, vector<1x4x4xf32>
    %28 = vector.shape_cast %27 : vector<1x4x4xf32> to vector<4x4xf32>
    %c0_30 = arith.constant 0 : index
    %c19 = arith.constant 19 : index
    %29 = vector.load %arg10[%c0_30, %c19] : memref<4x512xf32, #tpu.memory_space<vmem>>, vector<4x384xf32>
    %cst_31 = arith.constant dense<0.000000e+00> : vector<4x384xf32>
    %30 = tpu.matmul %28, %29, %cst_31 {dimension_numbers = #tpu.dot_dimension_numbers<[1], [0], [0], [1], [0, 0, 1, 1], [], []>} : vector<4x4xf32>, vector<4x384xf32>, vector<4x384xf32> -> vector<4x384xf32>
    %31 = arith.addf %26, %30 : vector<4x384xf32>
    %c5 = arith.constant 5 : index
    %c0_32 = arith.constant 0 : index
    %c0_33 = arith.constant 0 : index
    %32 = vector.load %arg5[%c5, %c0_32, %c0_33] : memref<9x4x4xf32, #tpu.memory_space<vmem>>, vector<1x4x4xf32>
    %33 = vector.shape_cast %32 : vector<1x4x4xf32> to vector<4x4xf32>
    %c0_34 = arith.constant 0 : index
    %c20 = arith.constant 20 : index
    %34 = vector.load %arg10[%c0_34, %c20] : memref<4x512xf32, #tpu.memory_space<vmem>>, vector<4x384xf32>
    %cst_35 = arith.constant dense<0.000000e+00> : vector<4x384xf32>
    %35 = tpu.matmul %33, %34, %cst_35 {dimension_numbers = #tpu.dot_dimension_numbers<[1], [0], [0], [1], [0, 0, 1, 1], [], []>} : vector<4x4xf32>, vector<4x384xf32>, vector<4x384xf32> -> vector<4x384xf32>
    %36 = arith.addf %31, %35 : vector<4x384xf32>
    %c6 = arith.constant 6 : index
    %c0_36 = arith.constant 0 : index
    %c0_37 = arith.constant 0 : index
    %37 = vector.load %arg5[%c6, %c0_36, %c0_37] : memref<9x4x4xf32, #tpu.memory_space<vmem>>, vector<1x4x4xf32>
    %38 = vector.shape_cast %37 : vector<1x4x4xf32> to vector<4x4xf32>
    %c0_38 = arith.constant 0 : index
    %c36 = arith.constant 36 : index
    %39 = vector.load %arg10[%c0_38, %c36] : memref<4x512xf32, #tpu.memory_space<vmem>>, vector<4x384xf32>
    %cst_39 = arith.constant dense<0.000000e+00> : vector<4x384xf32>
    %40 = tpu.matmul %38, %39, %cst_39 {dimension_numbers = #tpu.dot_dimension_numbers<[1], [0], [0], [1], [0, 0, 1, 1], [], []>} : vector<4x4xf32>, vector<4x384xf32>, vector<4x384xf32> -> vector<4x384xf32>
    %41 = arith.addf %36, %40 : vector<4x384xf32>
    %c7 = arith.constant 7 : index
    %c0_40 = arith.constant 0 : index
    %c0_41 = arith.constant 0 : index
    %42 = vector.load %arg5[%c7, %c0_40, %c0_41] : memref<9x4x4xf32, #tpu.memory_space<vmem>>, vector<1x4x4xf32>
    %43 = vector.shape_cast %42 : vector<1x4x4xf32> to vector<4x4xf32>
    %c0_42 = arith.constant 0 : index
    %c37 = arith.constant 37 : index
    %44 = vector.load %arg10[%c0_42, %c37] : memref<4x512xf32, #tpu.memory_space<vmem>>, vector<4x384xf32>
    %cst_43 = arith.constant dense<0.000000e+00> : vector<4x384xf32>
    %45 = tpu.matmul %43, %44, %cst_43 {dimension_numbers = #tpu.dot_dimension_numbers<[1], [0], [0], [1], [0, 0, 1, 1], [], []>} : vector<4x4xf32>, vector<4x384xf32>, vector<4x384xf32> -> vector<4x384xf32>
    %46 = arith.addf %41, %45 : vector<4x384xf32>
    %c8 = arith.constant 8 : index
    %c0_44 = arith.constant 0 : index
    %c0_45 = arith.constant 0 : index
    %47 = vector.load %arg5[%c8, %c0_44, %c0_45] : memref<9x4x4xf32, #tpu.memory_space<vmem>>, vector<1x4x4xf32>
    %48 = vector.shape_cast %47 : vector<1x4x4xf32> to vector<4x4xf32>
    %c0_46 = arith.constant 0 : index
    %c38 = arith.constant 38 : index
    %49 = vector.load %arg10[%c0_46, %c38] : memref<4x512xf32, #tpu.memory_space<vmem>>, vector<4x384xf32>
    %cst_47 = arith.constant dense<0.000000e+00> : vector<4x384xf32>
    %50 = tpu.matmul %48, %49, %cst_47 {dimension_numbers = #tpu.dot_dimension_numbers<[1], [0], [0], [1], [0, 0, 1, 1], [], []>} : vector<4x4xf32>, vector<4x384xf32>, vector<4x384xf32> -> vector<4x384xf32>
    %51 = arith.addf %46, %50 : vector<4x384xf32>
    %c0_48 = arith.constant 0 : index
    %c0_49 = arith.constant 0 : index
    %52 = vector.load %arg6[%c0_48, %c0_49] : memref<4x1xf32, #tpu.memory_space<vmem>>, vector<4x1xf32>
    %53 = vector.broadcast %52 : vector<4x1xf32> to vector<4x384xf32>
    %54 = arith.addf %51, %53 : vector<4x384xf32>
    %cst_50 = arith.constant 2.000000e-01 : f32
    %55 = vector.broadcast %cst_50 : f32 to vector<4x384xf32>
    %56 = arith.mulf %55, %54 : vector<4x384xf32>
    %57 = arith.maximumf %54, %56 : vector<4x384xf32>
    %c0_51 = arith.constant 0 : index
    %c0_52 = arith.constant 0 : index
    %58 = vector.load %arg7[%c0_51, %c0_52] : memref<4x4xf32, #tpu.memory_space<vmem>>, vector<4x4xf32>
    %cst_53 = arith.constant dense<0.000000e+00> : vector<4x384xf32>
    %59 = tpu.matmul %58, %57, %cst_53 {dimension_numbers = #tpu.dot_dimension_numbers<[1], [0], [0], [1], [0, 0, 1, 1], [], []>} : vector<4x4xf32>, vector<4x384xf32>, vector<4x384xf32> -> vector<4x384xf32>
    %c0_54 = arith.constant 0 : index
    %c0_55 = arith.constant 0 : index
    %60 = vector.load %arg8[%c0_54, %c0_55] : memref<4x1xf32, #tpu.memory_space<vmem>>, vector<4x1xf32>
    %61 = vector.broadcast %60 : vector<4x1xf32> to vector<4x384xf32>
    %62 = arith.addf %59, %61 : vector<4x384xf32>
    %c0_56 = arith.constant 0 : index
    %c0_57 = arith.constant 0 : index
    %c0_58 = arith.constant 0 : index
    %63 = vector.load %arg4[%c0_56, %c0_57, %c0_58] : memref<1x4x384xf32, #tpu.memory_space<vmem>>, vector<1x4x384xf32>
    %64 = vector.shape_cast %63 : vector<1x4x384xf32> to vector<4x384xf32>
    %65 = arith.addf %62, %64 : vector<4x384xf32>
    %c0_59 = arith.constant 0 : index
    %c0_60 = arith.constant 0 : index
    %c0_61 = arith.constant 0 : index
    %66 = vector.load %arg9[%c0_59, %c0_60, %c0_61] : memref<1x4x384xf32, #tpu.memory_space<vmem>>, vector<1x4x384xf32>
    %67 = vector.shape_cast %66 : vector<1x4x384xf32> to vector<4x384xf32>
    %68 = vector.shape_cast %65 : vector<4x384xf32> to vector<1x4x384xf32>
    tpu.vector_store %arg9[%c0_59, %c0_60, %c0_61], %68 {strides = array<i32>} : memref<1x4x384xf32, #tpu.memory_space<vmem>>, vector<1x4x384xf32>,
    return
  }
  func.func @transform_0(%arg0: i32, %arg1: i32) -> (i32, i32, i32) {
    %c0_i32 = arith.constant 0 : i32
    %c0_i32_0 = arith.constant 0 : i32
    return %arg0, %c0_i32, %arg1 : i32, i32, i32
  }
  func.func @transform_1(%arg0: i32, %arg1: i32) -> (i32, i32, i32) {
    %c1_i32 = arith.constant 1 : i32
    %0 = arith.addi %arg1, %c1_i32 : i32
    %c3_i32 = arith.constant 3 : i32
    %1 = arith.muli %0, %c3_i32 : i32
    %c0_i32 = arith.constant 0 : i32
    %c0_i32_0 = arith.constant 0 : i32
    return %arg0, %c0_i32, %1 : i32, i32, i32
  }
  func.func @transform_2(%arg0: i32, %arg1: i32) -> (i32, i32, i32) {
    %c0_i32 = arith.constant 0 : i32
    %c0_i32_0 = arith.constant 0 : i32
    return %arg0, %c0_i32, %arg1 : i32, i32, i32
  }
  func.func @transform_3(%arg0: i32, %arg1: i32) -> (i32, i32, i32) {
    %c0_i32 = arith.constant 0 : i32
    %c0_i32_0 = arith.constant 0 : i32
    %c0_i32_1 = arith.constant 0 : i32
    %c0_i32_2 = arith.constant 0 : i32
    return %c0_i32, %c0_i32_0, %c0_i32_1 : i32, i32, i32
  }
  func.func @transform_4(%arg0: i32, %arg1: i32) -> (i32, i32) {
    %c0_i32 = arith.constant 0 : i32
    %c0_i32_0 = arith.constant 0 : i32
    %c0_i32_1 = arith.constant 0 : i32
    return %c0_i32, %c0_i32_0 : i32, i32
  }
  func.func @transform_5(%arg0: i32, %arg1: i32) -> (i32, i32) {
    %c0_i32 = arith.constant 0 : i32
    %c0_i32_0 = arith.constant 0 : i32
    %c0_i32_1 = arith.constant 0 : i32
    return %c0_i32, %c0_i32_0 : i32, i32
  }
  func.func @transform_6(%arg0: i32, %arg1: i32) -> (i32, i32) {
    %c0_i32 = arith.constant 0 : i32
    %c0_i32_0 = arith.constant 0 : i32
    %c0_i32_1 = arith.constant 0 : i32
    return %c0_i32, %c0_i32_0 : i32, i32
  }
  func.func @transform_7(%arg0: i32, %arg1: i32) -> (i32, i32, i32) {
    %c0_i32 = arith.constant 0 : i32
    %c0_i32_0 = arith.constant 0 : i32
    return %arg0, %c0_i32, %arg1 : i32, i32, i32
  }
}

</mosaic_0001>

<bundles_post_ra>
// kernel: tile.8
= control target key start
LH: loop header
LB: loop body
LE: loop exit
PB: predicated region body
PF: predicated region fallthrough
CT: control target
= control target key end

     0   :  { %s22_s0 = inlined_call_operand.vmem [shape: f32[4], index: 0, kind: input, shape index: {}]   ;;  %s23_s1 = inlined_call_operand.vmem [shape: f32[4,4], index: 1, kind: output, shape index: {}]  }
   0x1   :  { %v4_v0 = vld [vmem:[%s22_s0] ss:$0 sm:$0xff] }
   0x2   :  { %5 = vst [vmem:[%s23_s1] sm:$0xf] %v4_v0 }

// kernel: tile.0
= control target key start
LH: loop header
LB: loop body
LE: loop exit
PB: predicated region body
PF: predicated region fallthrough
CT: control target
= control target key end

     0   :  { %s34_s8 = smov 125   ;;  %s35_s9 = smov 126   ;;  %vm7_vm0 = vcmask 7168   ;;  %s61_s0 = inlined_call_operand.vmem [shape: f32[4,4], index: 0, kind: input, shape index: {}]   ;;  %s62_s1 = inlined_call_operand.vmem [shape: f32[16,1], index: 1, kind: output, shape index: {}]  }
   0x1   :  { %v4_v0 = vld [vmem:[%s61_s0] sm:$0xf]  ;;  %s33_s0 = smov 127  }
   0x2   :  { %5 = vst [vmem:[#allocation0] sm:$0xf] %v4_v0 }
   0x9   :  { %v9_v1 = vld [vmem:[#allocation0] sm:$0xf]  }
   0xa   :  { %v21_v2 = vld [vmem:[#allocation0] sm:$0xf]   ;;  %10 = vrot.lane.b32.xlu0 %v9_v1, %s33_s0 }
   0xb   :  { %22 = vrot.lane.b32.xlu1 %v21_v2, %s34_s8  ;;  %v15_v3 = vld [vmem:[#allocation0] sm:$0xf]  }
   0xc   :  { %v6_v4 = vld [vmem:[#allocation0] sm:$0xf]  }
   0xd   :  { %8 = vst.msk [vmem:[%s62_s1] ss:$4 sm:$0xf] %vm7_vm0, %v6_v4  }
  0x12   :  { %16 = vrot.lane.b32.xlu0 %v15_v3, %s35_s9 }
  0x7c   :  { %v11_v5 = vpop.permute.xlu0 %10  }
  0x7d   :  { %v23_v6 = vpop.permute.xlu1 %22   ;;  %27 = vst.msk [vmem:[%s62_s1 + $0x1] ss:$4 sm:$0xf] %vm7_vm0, %v11_v5  }
  0x7e   :  { %29 = vst.msk [vmem:[%s62_s1 + $0x3] ss:$4 sm:$0xf] %vm7_vm0, %v23_v6  }
  0x84   :  { %v17_v7 = vpop.permute.xlu0 %16  }
  0x85   :  { %28 = vst.msk [vmem:[%s62_s1 + $0x2] ss:$4 sm:$0xf] %vm7_vm0, %v17_v7  }

// kernel: upsample_concat_squeeze.2
= control target key start
LH: loop header
LB: loop body
LE: loop exit
PB: predicated region body
PF: predicated region fallthrough
CT: control target
= control target key end

     0   :  { %s411_s12 = smov 0   ;;  %s413_s13 = smov 0   ;;  %s456_s0 = inlined_call_operand.vmem [shape: f32[2,8,128], index: 0, kind: input, shape index: {}]   ;;  %s457_s1 = inlined_call_operand.vmem [shape: f32[16,8], index: 1, kind: input, shape index: {}]   ;;  %s458_s2 = inlined_call_operand.vmem [shape: f32[16,1], index: 2, kind: input, shape index: {}]   ;;  %s459_s3 = inlined_call_operand.vmem [shape: f32[2,16,128], index: 3, kind: output, shape index: {}]  }
   0x1   :  { %s415_s14 = smov 0  }
   0x2 LB: > { %s25_s15 = sadd.s32 1, %s384_s13  ;;  %p330_p0 = scmp.ge.s32.totalorder %s388_s14, 1  ;;  %s388_s14 = sphi %s415_s14, %s13_s14   ;;  %s384_s13 = sphi %s413_s13, %s461_s13   ;;  %s380_s12 = sphi %s411_s12, %s460_s12  }
   0x3   : > { %p27_p1 = scmp.ge.s32.totalorder %s25_s15, 2  ;;  %p155_p2 = scmp.lt.s32.totalorder %s388_s14, 3 }
   0x5   : > { %s463_s15 = smov (%p27_p1, %s25_s15), 0  ;;  %p156_p3 = pnand %p330_p0, %p155_p2 }
   0x6   : > { %p184_p4 = scmp.lt.s32.totalorder (!%p156_p3), %s380_s12, 1 }
   0x7   : > { %159 = sbr.rel (%p156_p3) target bundleno = 147 (0x93), region = 32 }
   0xc   : > { %v202_v0 = vld [vmem:[%s458_s2] sm:$0xff]  ;;  %v390_v1 = vmov 0   ;;  %s465_s12 = smov (!%p184_p4, %s380_s12), 1  ;;  %vm214_vm0 = vcmask 64512   ;;  %v200_v3 = vld [vmem:[%s457_s1 + $0x8] sm:$0xff] }
   0xd   : > { %365 = vset.pattern.permute.xlu0 %v390_v1  ;;  %s331_s18 = sshll.u32 %s465_s12, 3  ;;  %v199_v2 = vld [vmem:[%s457_s1] sm:$0xff]  ;;  %v203_v5 = vld [vmem:[%s458_s2 + $0x8] sm:$0xff]  ;;  %s338_s28 = sshll.u32 %s465_s12, 4 }
   0xe   : > { %206 = vperm.xlu0 %365, %v202_v0   ;;  %s190_s21 = scalar_lea.vmem %s456_s0, %s331_s18  ;;  %s198_s4 = scalar_lea.vmem %s459_s3, %s338_s28 }
   0xf   : > { %v201_v4 = vld [vmem:[%s190_s21] sm:$0xff] }
  0x10   : > { %236 = vmatpush.msra.mxu0 %v201_v4  ;;  %339 = vmatpush.msra.mxu1 %v201_v4 }
  0x11   : > { %334 = vmatmul.msk.f32.vlgmr.msra.gmra.mxu0 %vm214_vm0, %v199_v2  ;;  %335 = vmatmul.msk.f32.vlgmr.msra.gmra.mxu1 %vm214_vm0, %v200_v3 }
  0x16   : > { %211 = vperm.xlu0 %365, %v203_v5  }
  0x80   : > { %v207_v6 = vpop.permute.xlu0 %206 }
  0x88   : > { %v212_v7 = vpop.permute.xlu0 %211 }
  0x8e   : > { %v238_v8 = vpop.f32.mrf.mxu0  ;;  %v241_v9 = vpop.f32.mrf.mxu1 }
  0x8f   : > { %v239_v10 = vadd.f32 %v238_v8, %v207_v6  ;;  %v242_v11 = vadd.f32 %v241_v9, %v212_v7 }
  0x91   : > { %244 = vst [vmem:[%s198_s4] sm:$0xff] %v239_v10 }
  0x92   : > { %245 = vst [vmem:[%s198_s4 + $0x8] sm:$0xff] %v242_v11 }
  0x93 PF: > { %s13_s14 = sadd.s32 1, %s388_s14   ;;  %s460_s12 = smov %s384_s13 }
  0x94   : > { %p10_p5 = scmp.ge.s32.totalorder %s13_s14, 4   ;;  %s461_s13 = smov %s463_s15 }
  0x96   :  { %12 = sbr.rel (!%p10_p5) target bundleno = 2 (0x2), region = 62 }

// kernel: upsample_concat_squeeze.3
= control target key start
LH: loop header
LB: loop body
LE: loop exit
PB: predicated region body
PF: predicated region fallthrough
CT: control target
= control target key end

     0   :  { %s1714_s24 = smov 0   ;;  %s1716_s25 = smov 0   ;;  %s1894_s0 = inlined_call_operand.vmem [shape: f32[2,4,512], index: 0, kind: input, shape index: {}, may-alias: {0,1}]   ;;  %s1895_s1 = inlined_call_operand.vmem [shape: f32[2,4,512], index: 1, kind: input, shape index: {}, may-alias: {0,1}]   ;;  %s1896_s2 = inlined_call_operand.vmem [shape: f32[2,4,384], index: 2, kind: input, shape index: {}]   ;;  %s1897_s3 = inlined_call_operand.vmem [shape: f32[9,4,4], index: 3, kind: input, shape index: {}]   ;;  %s1898_s4 = inlined_call_operand.vmem [shape: f32[4,1], index: 4, kind: input, shape index: {}]   ;;  %s1899_s5 = inlined_call_operand.vmem [shape: f32[4,4], index: 5, kind: input, shape index: {}]   ;;  %s1900_s6 = inlined_call_operand.vmem [shape: f32[4,1], index: 6, kind: input, shape index: {}]   ;;  %s1901_s7 = inlined_call_operand.vmem [shape: f32[2,4,384], index: 7, kind: output, shape index: {}]  }
   0x1   :  { %s1718_s26 = smov 0  }
   0x2 LB: > { %s29_s27 = sadd.s32 1, %s1659_s25  ;;  %p1524_p0 = scmp.ge.s32.totalorder %s1663_s26, 1  ;;  %s1663_s26 = sphi %s1718_s26, %s17_s26   ;;  %s1659_s25 = sphi %s1716_s25, %s1903_s25   ;;  %s1655_s24 = sphi %s1714_s24, %s1902_s24  }
   0x3   : > { %p31_p1 = scmp.ge.s32.totalorder %s29_s27, 2  ;;  %p306_p2 = scmp.lt.s32.totalorder %s1663_s26, 3 }
   0x5   : > { %s1905_s27 = smov (%p31_p1, %s29_s27), 0  ;;  %p307_p3 = pnand %p1524_p0, %p306_p2 }
   0x6   : > { %p374_p4 = scmp.lt.s32.totalorder (!%p307_p3), %s1655_s24, 1  ;;  %s1665_s13 = smov (!%p307_p3), 127  }
   0x7   : > { %310 = sbr.rel (%p307_p3) target bundleno = 503 (0x1f7), region = 48  ;;  %s1666_s14 = smov (!%p307_p3), 126  }
   0x8   : > { %s1667_s15 = smov (!%p307_p3), 110   ;;  %s1668_s16 = smov (!%p307_p3), 109  }
   0x9   : > { %s1669_s17 = smov (!%p307_p3), 108   ;;  %s1670_s22 = smov (!%p307_p3), 92  }
   0xa   : > { %s1671_s23 = smov (!%p307_p3), 91  }
   0xc   : > { %s1907_s24 = smov (!%p374_p4, %s1655_s24), 1  ;;  %vm457_vm0 = vcmask 1043456   ;;  %vm453_vm1 = vcmask 31744   ;;  %v425_v43 = vld [vmem:[%s1897_s3] sm:$0xf]  ;;  %vm449_vm2 = vcmask 1039360  }
   0xd   : > { %s1601_s28 = sshll.u32 %s1907_s24, 4  ;;  %s1605_s18 = smul.u32 12, %s1907_s24  ;;  %v1531_v47 = vld [vmem:[%s1897_s3 + $0x4] sm:$0xf]  ;;  %vm622_vm3 = vcmask 1031168   ;;  %vm719_vm4 = vcmask 900096  }
   0xe   : > { %s381_s8 = scalar_lea.vmem %s1894_s0, %s1601_s28  ;;  %s1603_s9 = sadd.s32 12, %s1601_s28  ;;  %v1544_v58 = vld [vmem:[%s1897_s3 + $0x8] sm:$0xf]  ;;  %vm816_vm5 = vcmask 891904   ;;  %vm913_vm6 = vcmask 883712   ;;  %vm1010_vm7 = vcmask 752640  }
   0xf   : > { %v1738_v0 = vld [vmem:[%s381_s8] sm:$0xff]  ;;  %s396_s12 = scalar_lea.vmem %s1895_s1, %s1603_s9  ;;  %v420_v1 = vld [vmem:[%s381_s8 + $0x8] sm:$0xf]  ;;  %s407_s21 = scalar_lea.vmem %s1896_s2, %s1605_s18  ;;  %vm1107_vm8 = vcmask 744448   ;;  %vm1204_vm9 = vcmask 736256  }
  0x10   : > { %v423_v2 = vld [vmem:[%s396_s12] sm:$0xf]  ;;  %434 = vst [vmem:[#allocation1] ss:$2 sm:$0xff] %v1738_v0  ;;  %v1375_v39 = vld [vmem:[%s407_s21 + $0x8] sm:$0xf] }
  0x11   : > { %422 = vst [vmem:[#allocation2 + $0x8] sm:$0xf] %v420_v1  ;;  %v1374_v34 = vld [vmem:[%s407_s21] sm:$0xff]  ;;  %s1672_s28 = smov 90  }
  0x12   : > { %424 = vst [vmem:[#allocation2 + $0xc] sm:$0xf] %v423_v2 }
  0x17   : > { %v437_v3 = vld.sshfl [vmem:[#allocation1] sm:$0xff pattern:$0x75316420]  ;;  %v438_v4 = vld.sshfl [vmem:[#allocation1 + $0x8] sm:$0xff pattern:$0x75316420] }
  0x18   : > { %441 = vrot.lane.b32.xlu0 %v437_v3, %s1665_s13  ;;  %526 = vst [vmem:[#allocation1] ss:$2 sm:$0xff] %v1738_v0  ;;  %v427_v6 = vld [vmem:[#allocation2 + $0x8] sm:$0xf] }
  0x19   : > { %v1745_v5 = vld [vmem:[#allocation2 + $0x8] sm:$0xff] }
  0x1a   : > { %436 = vst [vmem:[#allocation1 + $0x10] ss:$2 sm:$0xff] %v1745_v5 }
  0x1f   : > { %v1748_v7 = vld.sshfl [vmem:[#allocation1] sm:$0xff pattern:$0x75316420]  ;;  %v1750_v8 = vld.sshfl [vmem:[#allocation1 + $0x8] sm:$0xff pattern:$0x75316420] }
  0x20   : > { %443 = vrot.lane.b32.xlu0 %v438_v4, %s1665_s13  ;;  %607 = vst [vmem:[#allocation1] ss:$2 sm:$0xff] %v1738_v0  ;;  %1538 = vmatpush.msk.msra.mxu3 %vm457_vm0, %v1748_v7  ;;  %v1558_v7 = vld [vmem:[%s1897_s3 + $0x10] sm:$0xf] }
  0x21   : > { %v439_v9 = vld.sshfl [vmem:[#allocation1 + $0x10] sm:$0xff pattern:$0x75316420]  ;;  %v440_v10 = vld.sshfl [vmem:[#allocation1 + $0x18] sm:$0xff pattern:$0x75316420]  ;;  %1539 = vmatmul.msk.f32.vlgmr.msra.gmra.mxu3 %vm453_vm1, %v425_v43 }
  0x22   : > { %445 = vrot.lane.b32.xlu1 %v439_v9, %s1665_s13  ;;  %528 = vst [vmem:[#allocation1 + $0x10] ss:$2 sm:$0xff] %v427_v6 }
  0x27   : > { %v610_v11 = vld.sshfl [vmem:[#allocation1] sm:$0xff pattern:$0x75316420]  ;;  %v611_v12 = vld.sshfl [vmem:[#allocation1 + $0x8] sm:$0xff pattern:$0x75316420] }
  0x28   : > { %614 = vrot.lane.b32.xlu2 %v610_v11, %s1666_s14  ;;  %704 = vst [vmem:[#allocation1] ss:$2 sm:$0xff] %v1738_v0 }
  0x29   : > { %v1754_v13 = vld.sshfl [vmem:[#allocation1 + $0x10] sm:$0xff pattern:$0x75316420] }
  0x2a   : > { %447 = vrot.lane.b32.xlu1 %v440_v10, %s1665_s13  ;;  %609 = vst [vmem:[#allocation1 + $0x10] ss:$2 sm:$0xff] %v1745_v5 }
  0x2f   : > { %v707_v14 = vld.sshfl [vmem:[#allocation1] sm:$0xff pattern:$0x75316420]  ;;  %v708_v15 = vld.sshfl [vmem:[#allocation1 + $0x8] sm:$0xff pattern:$0x75316420] }
  0x30   : > { %801 = vst [vmem:[#allocation1] ss:$2 sm:$0xff] %v1738_v0  ;;  %616 = vrot.lane.b32.xlu2 %v611_v12, %s1666_s14 }
  0x31   : > { %v613_v16 = vld.sshfl [vmem:[#allocation1 + $0x18] sm:$0xff pattern:$0x75316420]  ;;  %v612_v17 = vld.sshfl [vmem:[#allocation1 + $0x10] sm:$0xff pattern:$0x75316420] }
  0x32   : > { %620 = vrot.lane.b32.xlu1 %v613_v16, %s1666_s14  ;;  %706 = vst [vmem:[#allocation1 + $0x10] ss:$2 sm:$0xff] %v1745_v5  ;;  %618 = vrot.lane.b32.xlu0 %v612_v17, %s1666_s14  ;;  %s417_s14 = scalar_lea.vmem %s1901_s7, %s1605_s18 }
  0x37   : > { %v805_v18 = vld.sshfl [vmem:[#allocation1 + $0x8] sm:$0xff pattern:$0x75316420]  ;;  %v804_v19 = vld.sshfl [vmem:[#allocation1] sm:$0xff pattern:$0x75316420] }
  0x38   : > { %713 = vrot.lane.b32.xlu2 %v708_v15, %s1667_s15  ;;  %898 = vst [vmem:[#allocation1] ss:$2 sm:$0xff] %v1738_v0 }
  0x39   : > { %v709_v20 = vld.sshfl [vmem:[#allocation1 + $0x10] sm:$0xff pattern:$0x75316420]  ;;  %v710_v21 = vld.sshfl [vmem:[#allocation1 + $0x18] sm:$0xff pattern:$0x75316420] }
  0x3a   : > { %803 = vst [vmem:[#allocation1 + $0x10] ss:$2 sm:$0xff] %v1745_v5  ;;  %715 = vrot.lane.b32.xlu0 %v709_v20, %s1667_s15  ;;  %711 = vrot.lane.b32.xlu1 %v707_v14, %s1667_s15 }
  0x3f   : > { %v901_v22 = vld.sshfl [vmem:[#allocation1] sm:$0xff pattern:$0x75316420]  ;;  %v902_v23 = vld.sshfl [vmem:[#allocation1 + $0x8] sm:$0xff pattern:$0x75316420] }
  0x40   : > { %717 = vrot.lane.b32.xlu2 %v710_v21, %s1667_s15  ;;  %995 = vst [vmem:[#allocation1] ss:$2 sm:$0xff] %v1738_v0 }
  0x41   : > { %v806_v24 = vld.sshfl [vmem:[#allocation1 + $0x10] sm:$0xff pattern:$0x75316420]  ;;  %v807_v25 = vld.sshfl [vmem:[#allocation1 + $0x18] sm:$0xff pattern:$0x75316420] }
  0x42   : > { %810 = vrot.lane.b32.xlu1 %v805_v18, %s1668_s16  ;;  %808 = vrot.lane.b32.xlu0 %v804_v19, %s1668_s16  ;;  %900 = vst [vmem:[#allocation1 + $0x10] ss:$2 sm:$0xff] %v1745_v5  ;;  %v1572_v18 = vld [vmem:[%s1897_s3 + $0x18] sm:$0xf] }
  0x47   : > { %v998_v26 = vld.sshfl [vmem:[#allocation1] sm:$0xff pattern:$0x75316420]  ;;  %v999_v27 = vld.sshfl [vmem:[#allocation1 + $0x8] sm:$0xff pattern:$0x75316420] }
  0x48   : > { %812 = vrot.lane.b32.xlu2 %v806_v24, %s1668_s16  ;;  %1092 = vst [vmem:[#allocation1] ss:$2 sm:$0xff] %v1738_v0 }
  0x49   : > { %v903_v28 = vld.sshfl [vmem:[#allocation1 + $0x10] sm:$0xff pattern:$0x75316420]  ;;  %v904_v29 = vld.sshfl [vmem:[#allocation1 + $0x18] sm:$0xff pattern:$0x75316420] }
  0x4a   : > { %814 = vrot.lane.b32.xlu0 %v807_v25, %s1668_s16  ;;  %905 = vrot.lane.b32.xlu1 %v901_v22, %s1669_s17  ;;  %997 = vst [vmem:[#allocation1 + $0x10] ss:$2 sm:$0xff] %v1745_v5  ;;  %v1280_v22 = vld [vmem:[%s1898_s4] sm:$0xf] }
  0x4f   : > { %v1096_v30 = vld.sshfl [vmem:[#allocation1 + $0x8] sm:$0xff pattern:$0x75316420]  ;;  %v1095_v31 = vld.sshfl [vmem:[#allocation1] sm:$0xff pattern:$0x75316420] }
  0x50   : > { %907 = vrot.lane.b32.xlu2 %v902_v23, %s1669_s17  ;;  %1189 = vst [vmem:[#allocation1] ss:$2 sm:$0xff] %v1738_v0  ;;  %v1551_v0 = vld [vmem:[%s1897_s3 + $0xc] sm:$0xf]  ;;  %v1673_v23 = vmov 0  }
  0x51   : > { %v1000_v32 = vld.sshfl [vmem:[#allocation1 + $0x10] sm:$0xff pattern:$0x75316420]  ;;  %v1001_v33 = vld.sshfl [vmem:[#allocation1 + $0x18] sm:$0xff pattern:$0x75316420]  ;;  %1639 = vset.pattern.permute.xlu2 %v1673_v23  ;;  %1640 = vset.pattern.permute.xlu0 %v1673_v23 }
  0x52   : > { %909 = vrot.lane.b32.xlu0 %v903_v28, %s1669_s17  ;;  %1002 = vrot.lane.b32.xlu1 %v998_v26, %s1670_s22  ;;  %1094 = vst [vmem:[#allocation1 + $0x10] ss:$2 sm:$0xff] %v1745_v5 }
  0x57   : > { %v1192_v35 = vld.sshfl [vmem:[#allocation1] sm:$0xff pattern:$0x75316420]  ;;  %v1193_v36 = vld.sshfl [vmem:[#allocation1 + $0x8] sm:$0xff pattern:$0x75316420] }
  0x58   : > { %1004 = vrot.lane.b32.xlu2 %v999_v27, %s1670_s22  ;;  %1378 = vst [vmem:[#allocation1] ss:$2 sm:$0xff] %v1374_v34 }
  0x59   : > { %v1097_v37 = vld.sshfl [vmem:[#allocation1 + $0x10] sm:$0xff pattern:$0x75316420]  ;;  %v1098_v38 = vld.sshfl [vmem:[#allocation1 + $0x18] sm:$0xff pattern:$0x75316420] }
  0x5a   : > { %911 = vrot.lane.b32.xlu0 %v904_v29, %s1669_s17  ;;  %1006 = vrot.lane.b32.xlu1 %v1000_v32, %s1670_s22  ;;  %1191 = vst [vmem:[#allocation1 + $0x10] ss:$2 sm:$0xff] %v1745_v5  ;;  %v1579_v32 = vld [vmem:[%s1897_s3 + $0x1c] sm:$0xf] }
  0x60   : > { %1008 = vrot.lane.b32.xlu2 %v1001_v33, %s1670_s22 }
  0x61   : > { %v1194_v40 = vld.sshfl [vmem:[#allocation1 + $0x10] sm:$0xff pattern:$0x75316420]  ;;  %v1195_v41 = vld.sshfl [vmem:[#allocation1 + $0x18] sm:$0xff pattern:$0x75316420] }
  0x62   : > { %1103 = vrot.lane.b32.xlu1 %v1097_v37, %s1671_s23  ;;  %1101 = vrot.lane.b32.xlu0 %v1096_v30, %s1671_s23  ;;  %1380 = vst [vmem:[#allocation1 + $0x10] ss:$2 sm:$0xff] %v1375_v39 }
  0x68   : > { %1099 = vrot.lane.b32.xlu2 %v1095_v31, %s1671_s23 }
  0x6a   : > { %1105 = vrot.lane.b32.xlu0 %v1098_v38, %s1671_s23  ;;  %1196 = vrot.lane.b32.xlu1 %v1192_v35, %s1672_s28  ;;  %v1586_v38 = vld [vmem:[%s1897_s3 + $0x20] sm:$0xf] }
  0x70   : > { %1198 = vrot.lane.b32.xlu2 %v1193_v36, %s1672_s28 }
  0x72   : > { %1200 = vrot.lane.b32.xlu0 %v1194_v40, %s1672_s28  ;;  %1202 = vrot.lane.b32.xlu1 %v1195_v41, %s1672_s28 }
  0x78   : > { %1283 = vperm.xlu2 %1639, %v1280_v22  }
  0x82   : > { %v615_v42 = vpop.permute.xlu2 %614 }
  0x8a   : > { %v442_v44 = vpop.permute.xlu0 %441  ;;  %v617_v45 = vpop.permute.xlu2 %616 }
  0x8b   : > { %v623_v55 = vsel %vm622_vm3, %v615_v42, %v617_v45 }
  0x92   : > { %v444_v46 = vpop.permute.xlu0 %443  ;;  %v714_v49 = vpop.permute.xlu2 %713 }
  0x93   : > { %v450_v48 = vsel %vm449_vm2, %v442_v44, %v444_v46 }
  0x94   : > { %v446_v50 = vpop.permute.xlu1 %445  ;;  %1532 = vmatpush.msk.msra.mxu0 %vm457_vm0, %v450_v48 }
  0x95   : > { %v451_v51 = vsel %vm449_vm2, %v444_v46, %v446_v50  ;;  %1533 = vmatmul.msk.f32.vlgmr.msra.gmra.mxu0 %vm453_vm1, %v1531_v47 }
  0x96   : > { %1534 = vmatpush.msk.msra.mxu1 %vm457_vm0, %v451_v51  ;;  %1540 = vmatpush.msk.msrb.mxu0 %vm457_vm0, %v1750_v8 }
  0x97   : > { %1535 = vmatmul.msk.f32.vlgmr.msra.gmra.mxu1 %vm453_vm1, %v1531_v47 }
  0x98   : > { %1542 = vmatpush.msk.msrb.mxu1 %vm457_vm0, %v1754_v13  ;;  %v1565_v13 = vld [vmem:[%s1897_s3 + $0x14] sm:$0xf] }
  0x9a   : > { %v718_v54 = vpop.permute.xlu2 %717 }
  0x9c   : > { %v448_v52 = vpop.permute.xlu1 %447 }
  0x9d   : > { %v452_v53 = vsel %vm449_vm2, %v446_v50, %v448_v52  ;;  %1541 = vmatmul.msk.f32.vlgmr.msrb.gmra.mxu0 %vm453_vm1, %v425_v43 }
  0x9e   : > { %1536 = vmatpush.msk.msra.mxu2 %vm457_vm0, %v452_v53 }
  0x9f   : > { %1543 = vmatmul.msk.f32.vlgmr.msrb.gmra.mxu1 %vm453_vm1, %v425_v43  ;;  %1537 = vmatmul.msk.f32.vlgmr.msra.gmra.mxu2 %vm453_vm1, %v1531_v47 }
  0xa0   : > { %1545 = vmatpush.msk.msrb.mxu2 %vm457_vm0, %v623_v55 }
  0xa2   : > { %v813_v61 = vpop.permute.xlu2 %812 }
  0xa4   : > { %v621_v56 = vpop.permute.xlu1 %620  ;;  %v619_v57 = vpop.permute.xlu0 %618 }
  0xa5   : > { %v625_v59 = vsel %vm622_vm3, %v619_v57, %v621_v56  ;;  %v624_v60 = vsel %vm622_vm3, %v617_v45, %v619_v57  ;;  %v558_v50 = vpop.f32.mrf.mxu3 }
  0xa6   : > { %1547 = vmatpush.msk.msrb.mxu3 %vm457_vm0, %v624_v60  ;;  %1549 = vmatpush.msk.msra.mxu0 %vm457_vm0, %v625_v59 }
  0xa7   : > { %1548 = vmatmul.msk.f32.vlgmr.msrb.gmra.mxu3 %vm453_vm1, %v1544_v58  ;;  %1550 = vmatmul.msk.f32.vlgmr.msra.gmra.mxu0 %vm453_vm1, %v1544_v58 }
  0xa8   : > { %1546 = vmatmul.msk.f32.vlgmr.msrb.gmra.mxu2 %vm453_vm1, %v1544_v58 }
  0xaa   : > { %v908_v4 = vpop.permute.xlu2 %907 }
  0xac   : > { %v716_v62 = vpop.permute.xlu0 %715  ;;  %v712_v63 = vpop.permute.xlu1 %711 }
  0xad   : > { %v721_v1 = vsel %vm719_vm4, %v714_v49, %v716_v62  ;;  %v722_v2 = vsel %vm719_vm4, %v716_v62, %v718_v54  ;;  %v720_v3 = vsel %vm719_vm4, %v712_v63, %v714_v49 }
  0xae   : > { %1552 = vmatpush.msk.msra.mxu1 %vm457_vm0, %v720_v3  ;;  %1554 = vmatpush.msk.msra.mxu2 %vm457_vm0, %v721_v1 }
  0xaf   : > { %1556 = vmatpush.msk.msra.mxu3 %vm457_vm0, %v722_v2  ;;  %1553 = vmatmul.msk.f32.vlgmr.msra.gmra.mxu1 %vm453_vm1, %v1551_v0 }
  0xb0   : > { %1555 = vmatmul.msk.f32.vlgmr.msra.gmra.mxu2 %vm453_vm1, %v1551_v0  ;;  %1557 = vmatmul.msk.f32.vlgmr.msra.gmra.mxu3 %vm453_vm1, %v1551_v0 }
  0xb2   : > { %v1005_v10 = vpop.permute.xlu2 %1004 }
  0xb4   : > { %v811_v5 = vpop.permute.xlu1 %810  ;;  %v809_v6 = vpop.permute.xlu0 %808 }
  0xb5   : > { %v818_v8 = vsel %vm816_vm5, %v811_v5, %v813_v61  ;;  %v817_v9 = vsel %vm816_vm5, %v809_v6, %v811_v5 }
  0xb6   : > { %1559 = vmatpush.msk.msrb.mxu0 %vm457_vm0, %v817_v9  ;;  %1561 = vmatpush.msk.msrb.mxu1 %vm457_vm0, %v818_v8 }
  0xb7   : > { %1560 = vmatmul.msk.f32.vlgmr.msrb.gmra.mxu0 %vm453_vm1, %v1558_v7  ;;  %1562 = vmatmul.msk.f32.vlgmr.msrb.gmra.mxu1 %vm453_vm1, %v1558_v7 }
  0xba   : > { %v1009_v21 = vpop.permute.xlu2 %1008 }
  0xbc   : > { %v815_v11 = vpop.permute.xlu0 %814  ;;  %v906_v12 = vpop.permute.xlu1 %905 }
  0xbd   : > { %v819_v14 = vsel %vm816_vm5, %v813_v61, %v815_v11  ;;  %v914_v15 = vsel %vm913_vm6, %v906_v12, %v908_v4 }
  0xbe   : > { %1563 = vmatpush.msk.msrb.mxu2 %vm457_vm0, %v819_v14  ;;  %1566 = vmatpush.msk.msrb.mxu3 %vm457_vm0, %v914_v15 }
  0xbf   : > { %1564 = vmatmul.msk.f32.vlgmr.msrb.gmra.mxu2 %vm453_vm1, %v1558_v7  ;;  %1567 = vmatmul.msk.f32.vlgmr.msrb.gmra.mxu3 %vm453_vm1, %v1565_v13 }
  0xc2   : > { %v1100_v29 = vpop.permute.xlu2 %1099 }
  0xc4   : > { %v910_v16 = vpop.permute.xlu0 %909  ;;  %v1003_v17 = vpop.permute.xlu1 %1002 }
  0xc5   : > { %v915_v19 = vsel %vm913_vm6, %v908_v4, %v910_v16  ;;  %v1011_v20 = vsel %vm1010_vm7, %v1003_v17, %v1005_v10  ;;  %v1296_v4 = vld [vmem:[%s1900_s6] sm:$0xf] }
  0xc6   : > { %1568 = vmatpush.msk.msra.mxu0 %vm457_vm0, %v915_v19  ;;  %1573 = vmatpush.msk.msra.mxu2 %vm457_vm0, %v1011_v20 }
  0xc7   : > { %1569 = vmatmul.msk.f32.vlgmr.msra.gmra.mxu0 %vm453_vm1, %v1565_v13  ;;  %1574 = vmatmul.msk.f32.vlgmr.msra.gmra.mxu2 %vm453_vm1, %v1572_v18 }
  0xc8   : > { %1299 = vperm.xlu0 %1640, %v1296_v4  }
  0xca   : > { %v1199_v35 = vpop.permute.xlu2 %1198 }
  0xcc   : > { %v912_v24 = vpop.permute.xlu0 %911  ;;  %v1007_v25 = vpop.permute.xlu1 %1006 }
  0xcd   : > { %v916_v26 = vsel %vm913_vm6, %v910_v16, %v912_v24  ;;  %v1012_v27 = vsel %vm1010_vm7, %v1005_v10, %v1007_v25  ;;  %v1013_v28 = vsel %vm1010_vm7, %v1007_v25, %v1009_v21 }
  0xce   : > { %1570 = vmatpush.msk.msra.mxu1 %vm457_vm0, %v916_v26  ;;  %1575 = vmatpush.msk.msra.mxu3 %vm457_vm0, %v1012_v27 }
  0xcf   : > { %1577 = vmatpush.msk.msrb.mxu0 %vm457_vm0, %v1013_v28  ;;  %1571 = vmatmul.msk.f32.vlgmr.msra.gmra.mxu1 %vm453_vm1, %v1565_v13 }
  0xd0   : > { %1576 = vmatmul.msk.f32.vlgmr.msra.gmra.mxu3 %vm453_vm1, %v1572_v18  ;;  %1578 = vmatmul.msk.f32.vlgmr.msrb.gmra.mxu0 %vm453_vm1, %v1572_v18 }
  0xd2   : > { %v1284_v16 = vpop.permute.xlu2 %1283 }
  0xd4   : > { %v1104_v30 = vpop.permute.xlu1 %1103  ;;  %v1102_v31 = vpop.permute.xlu0 %1101 }
  0xd5   : > { %v1109_v33 = vsel %vm1107_vm8, %v1102_v31, %v1104_v30  ;;  %v1108_v34 = vsel %vm1107_vm8, %v1100_v29, %v1102_v31 }
  0xd6   : > { %1580 = vmatpush.msk.msrb.mxu1 %vm457_vm0, %v1108_v34  ;;  %1582 = vmatpush.msk.msrb.mxu2 %vm457_vm0, %v1109_v33 }
  0xd7   : > { %1581 = vmatmul.msk.f32.vlgmr.msrb.gmra.mxu1 %vm453_vm1, %v1579_v32  ;;  %1583 = vmatmul.msk.f32.vlgmr.msrb.gmra.mxu2 %vm453_vm1, %v1579_v32 }
  0xdc   : > { %v1106_v36 = vpop.permute.xlu0 %1105  ;;  %v1197_v37 = vpop.permute.xlu1 %1196 }
  0xdd   : > { %v1110_v39 = vsel %vm1107_vm8, %v1104_v30, %v1106_v36  ;;  %v1205_v40 = vsel %vm1204_vm9, %v1197_v37, %v1199_v35  ;;  %v1295_v30 = vld [vmem:[%s1899_s5] sm:$0xf] }
  0xde   : > { %1584 = vmatpush.msk.msrb.mxu3 %vm457_vm0, %v1110_v39  ;;  %1587 = vmatpush.msk.msra.mxu0 %vm457_vm0, %v1205_v40 }
  0xdf   : > { %1585 = vmatmul.msk.f32.vlgmr.msrb.gmra.mxu3 %vm453_vm1, %v1579_v32  ;;  %1588 = vmatmul.msk.f32.vlgmr.msra.gmra.mxu0 %vm453_vm1, %v1586_v38 }
  0xe4   : > { %v1201_v41 = vpop.permute.xlu0 %1200  ;;  %v1203_v42 = vpop.permute.xlu1 %1202 }
  0xe5   : > { %v1206_v43 = vsel %vm1204_vm9, %v1199_v35, %v1201_v41  ;;  %v1207_v44 = vsel %vm1204_vm9, %v1201_v41, %v1203_v42 }
  0xe6   : > { %1589 = vmatpush.msk.msra.mxu1 %vm457_vm0, %v1206_v43  ;;  %1591 = vmatpush.msk.msra.mxu2 %vm457_vm0, %v1207_v44 }
  0xe7   : > { %1590 = vmatmul.msk.f32.vlgmr.msra.gmra.mxu1 %vm453_vm1, %v1586_v38  ;;  %1592 = vmatmul.msk.f32.vlgmr.msra.gmra.mxu2 %vm453_vm1, %v1586_v38 }
 0x112   : > { %v481_v45 = vpop.f32.mrf.mxu0 }
 0x113   : > { %v559_v58 = vadd.f32 %v558_v50, %v481_v45 }
 0x114   : > { %v501_v46 = vpop.f32.mrf.mxu1 }
 0x11a   : > { %v578_v48 = vpop.f32.mrf.mxu0 }
 0x11b   : > { %v579_v0 = vadd.f32 %v578_v48, %v501_v46  ;;  %v1382_v48 = vld.sshfl [vmem:[#allocation1 + $0x8] sm:$0xff pattern:$0x75316420] }
 0x11c   : > { %v598_v49 = vpop.f32.mrf.mxu1 }
 0x122   : > { %v521_v47 = vpop.f32.mrf.mxu2 }
 0x123   : > { %v599_v8 = vadd.f32 %v598_v49, %v521_v47  ;;  %v1381_v49 = vld.sshfl [vmem:[#allocation1] sm:$0xff pattern:$0x75316420] }
 0x124   : > { %v692_v52 = vpop.f32.mrf.mxu0 }
 0x125   : > { %v697_v13 = vadd.f32 %v692_v52, %v599_v8 }
 0x12a   : > { %v672_v54 = vpop.f32.mrf.mxu3 }
 0x12b   : > { %v652_v51 = vpop.f32.mrf.mxu2  ;;  %v696_v5 = vadd.f32 %v672_v54, %v579_v0 }
 0x12c   : > { %v749_v53 = vpop.f32.mrf.mxu1  ;;  %v695_v62 = vadd.f32 %v652_v51, %v559_v58 }
 0x12e   : > { %v792_v1 = vadd.f32 %v749_v53, %v695_v62 }
 0x133   : > { %v769_v55 = vpop.f32.mrf.mxu2  ;;  %v789_v59 = vpop.f32.mrf.mxu3 }
 0x134   : > { %v846_v56 = vpop.f32.mrf.mxu0  ;;  %v866_v57 = vpop.f32.mrf.mxu1  ;;  %v793_v11 = vadd.f32 %v769_v55, %v696_v5  ;;  %v794_v20 = vadd.f32 %v789_v59, %v697_v13  ;;  %v1383_v55 = vld.sshfl [vmem:[#allocation1 + $0x10] sm:$0xff pattern:$0x75316420] }
 0x135   : > { %v889_v6 = vadd.f32 %v846_v56, %v792_v1 }
 0x136   : > { %v890_v17 = vadd.f32 %v866_v57, %v793_v11 }
 0x13a   : > { %v1300_v44 = vpop.permute.xlu0 %1299 }
 0x142   : > { %v886_v60 = vpop.f32.mrf.mxu2  ;;  %v943_v2 = vpop.f32.mrf.mxu3 }
 0x143   : > { %v986_v9 = vadd.f32 %v943_v2, %v889_v6  ;;  %v891_v24 = vadd.f32 %v886_v60, %v794_v20 }
 0x144   : > { %v963_v61 = vpop.f32.mrf.mxu0 }
 0x145   : > { %v987_v21 = vadd.f32 %v963_v61, %v890_v17 }
 0x14a   : > { %v1040_v7 = vpop.f32.mrf.mxu2 }
 0x14b   : > { %v1083_v12 = vadd.f32 %v1040_v7, %v986_v9 }
 0x14c   : > { %v983_v63 = vpop.f32.mrf.mxu1 }
 0x14d   : > { %v1080_v3 = vpop.f32.mrf.mxu0  ;;  %v988_v27 = vadd.f32 %v983_v63, %v891_v24 }
 0x14f   : > { %v1085_v34 = vadd.f32 %v1080_v3, %v988_v27 }
 0x153   : > { %v1060_v19 = vpop.f32.mrf.mxu3 }
 0x154   : > { %v1137_v10 = vpop.f32.mrf.mxu1  ;;  %v1084_v25 = vadd.f32 %v1060_v19, %v987_v21 }
 0x155   : > { %v1180_v14 = vadd.f32 %v1137_v10, %v1083_v12 }
 0x15a   : > { %v1157_v23 = vpop.f32.mrf.mxu2 }
 0x15b   : > { %v1181_v28 = vadd.f32 %v1157_v23, %v1084_v25 }
 0x15c   : > { %v1234_v15 = vpop.f32.mrf.mxu0 }
 0x15d   : > { %v1277_v18 = vadd.f32 %v1234_v15, %v1180_v14 }
 0x15f   : > { %v1286_v22 = vadd.f32 %v1284_v16, %v1277_v18 }
 0x161   : > { %v1289_v26 = vmul.f32 0.2, %v1286_v22 }
 0x162   : > { %v1177_v33 = vpop.f32.mrf.mxu3 }
 0x163   : > { %v1292_v29 = vmax.f32 %v1286_v22, %v1289_v26  ;;  %v1182_v36 = vadd.f32 %v1177_v33, %v1085_v34 }
 0x164   : > { %v1254_v31 = vpop.f32.mrf.mxu1 }
 0x165   : > { %v1278_v32 = vadd.f32 %v1254_v31, %v1181_v28  ;;  %1593 = vmatpush.msk.msra.mxu3 %vm457_vm0, %v1292_v29 }
 0x166   : > { %1594 = vmatmul.msk.f32.vlgmr.msra.gmra.mxu3 %vm453_vm1, %v1295_v30 }
 0x167   : > { %v1287_v35 = vadd.f32 %v1284_v16, %v1278_v32 }
 0x169   : > { %v1290_v37 = vmul.f32 0.2, %v1287_v35 }
 0x16a   : > { %v1274_v38 = vpop.f32.mrf.mxu2 }
 0x16b   : > { %v1293_v39 = vmax.f32 %v1287_v35, %v1290_v37  ;;  %v1279_v40 = vadd.f32 %v1274_v38, %v1182_v36 }
 0x16d   : > { %v1288_v41 = vadd.f32 %v1284_v16, %v1279_v40  ;;  %1595 = vmatpush.msk.msrb.mxu0 %vm457_vm0, %v1293_v39 }
 0x16e   : > { %1596 = vmatmul.msk.f32.vlgmr.msrb.gmra.mxu0 %vm453_vm1, %v1295_v30 }
 0x16f   : > { %v1291_v42 = vmul.f32 0.2, %v1288_v41 }
 0x171   : > { %v1294_v43 = vmax.f32 %v1288_v41, %v1291_v42 }
 0x173   : > { %1597 = vmatpush.msk.msrb.mxu1 %vm457_vm0, %v1294_v43 }
 0x174   : > { %1598 = vmatmul.msk.f32.vlgmr.msrb.gmra.mxu1 %vm453_vm1, %v1295_v30 }
 0x1e9   : > { %v1331_v45 = vpop.f32.mrf.mxu3 }
 0x1ea   : > { %v1332_v46 = vadd.f32 %v1331_v45, %v1300_v44 }
 0x1eb   : > { %v1351_v47 = vpop.f32.mrf.mxu0 }
 0x1ec   : > { %v1352_v50 = vadd.f32 %v1351_v47, %v1300_v44  ;;  %v1387_v52 = vadd.f32 %v1381_v49, %v1332_v46 }
 0x1ee   : > { %v1388_v51 = vadd.f32 %v1382_v48, %v1352_v50 }
 0x1f0   : > { %v1392_v53 = vrot.slane %v1388_v51, 4 }
 0x1f1   : > { %v1371_v54 = vpop.f32.mrf.mxu1 }
 0x1f2   : > { %v1393_v56 = vsel %vm457_vm0, %v1387_v52, %v1392_v53  ;;  %v1372_v57 = vadd.f32 %v1371_v54, %v1300_v44 }
 0x1f3   : > { %1395 = vst [vmem:[%s417_s14] sm:$0xff] %v1393_v56 }
 0x1f4   : > { %v1389_v58 = vadd.f32 %v1383_v55, %v1372_v57 }
 0x1f6   : > { %1396 = vst [vmem:[%s417_s14 + $0x8] sm:$0xf] %v1389_v58 }
 0x1f7 PF: > { %s17_s26 = sadd.s32 1, %s1663_s26   ;;  %s1902_s24 = smov %s1659_s25 }
 0x1f8   : > { %p14_p5 = scmp.ge.s32.totalorder %s17_s26, 4   ;;  %s1903_s25 = smov %s1905_s27 }
 0x1fa   :  { %16 = sbr.rel (!%p14_p5) target bundleno = 2 (0x2), region = 102 }

</bundles_post_ra>
